<compile_context>
chip_gen: v7x
topology: tpu7x:2x2x1
jax: 0.10.0
libtpu: 0.0.40
codegen_flags: <defaults>
</compile_context>

<pallas_src>
import jax
import jax.numpy as jnp
from jax.experimental import pallas as pl
from jax.experimental.pallas import tpu as pltpu


def _mlp_unembed_kernel(e_ref, w1_ref, b1_ref, wu_ref, out_ref, h_ref):
    # e_ref:  (TB, D)   bf16  summed embeddings for this batch tile (resident)
    # w1_ref: (D, D)    bf16  linear weight stored (in, out): h = e @ w1 (resident)
    # b1_ref: (1, D)    f32   linear bias (resident)
    # wu_ref: (D, TV)   bf16  unembedding weight tile stored (d, vocab) (streamed)
    # out_ref:(TB, TV)  f32   logits tile
    # h_ref:  (TB, D)   bf16  VMEM scratch holding relu(e @ w1 + b1) for this
    #                         batch tile; computed once at vocab step 0.
    @pl.when(pl.program_id(1) == 0)
    def _():
        h = jnp.dot(e_ref[...], w1_ref[...], preferred_element_type=jnp.float32)
        h_ref[...] = jnp.maximum(h + b1_ref[...], 0.0).astype(h_ref.dtype)

    out_ref[...] = jnp.dot(
        h_ref[...], wu_ref[...],
        preferred_element_type=jnp.float32).astype(out_ref.dtype)


def mymodel_x_forward(x_ids, embed1_w, embed2_w, l1_w, l1_b, unembed_w,
                      *, tb=128, tv=256, compute_dtype=jnp.bfloat16):
    """x_ids: (B, 2) int32 token ids -> (B, n_vocab) float32 logits."""
    B, two = x_ids.shape
    assert two == 2
    V, D = unembed_w.shape
    assert embed1_w.shape == (V, D) and embed2_w.shape == (V, D)
    assert l1_w.shape == (D, D) and l1_b.shape == (D,)

    tb = min(tb, B)
    tv = min(tv, V)
    assert B % tb == 0, "batch must be a multiple of the batch tile"
    assert V % tv == 0, "vocab must be a multiple of the vocab tile"

    # One-time layout / dtype changes outside the kernel (no in-kernel .T):
    w1_t = l1_w.T.astype(compute_dtype)            # (D_in, D_out)
    wu_t = unembed_w.T.astype(compute_dtype)       # (D, V)
    b1_2d = l1_b.reshape(1, D).astype(jnp.float32)

    # Glue: two-table embedding lookup + sum (data-dependent gather in JAX).
    e = (jnp.take(embed1_w, x_ids[:, 0], axis=0)
         + jnp.take(embed2_w, x_ids[:, 1], axis=0)).astype(compute_dtype)

    # Rough VMEM estimate (double-buffered inputs + output + scratch); only
    # raise the scoped limit when the default (~32 MiB) would not be enough.
    cd = jnp.dtype(compute_dtype).itemsize
    est = (2 * (tb * D * cd + D * D * cd + D * 4 + D * tv * cd + tb * tv * 4)
           + tb * D * cd)
    vmem_limit = int(est * 1.5) if est * 1.5 > (32 << 20) else None

    # batch OUTER (parallel, megacore-shardable), vocab INNER (arbitrary, so
    # the per-batch-tile h scratch is valid: vocab step 0 runs first).
    grid = (B // tb, V // tv)

    out = pl.pallas_call(
        _mlp_unembed_kernel,
        out_shape=jax.ShapeDtypeStruct((B, V), jnp.float32),
        grid_spec=pltpu.PrefetchScalarGridSpec(
            num_scalar_prefetch=0,
            grid=grid,
            in_specs=[
                pl.BlockSpec((tb, D), lambda i, j: (i, 0)),   # activations (resident over j)
                pl.BlockSpec((D, D), lambda i, j: (0, 0)),    # l1 weight (resident)
                pl.BlockSpec((1, D), lambda i, j: (0, 0)),    # l1 bias (resident)
                pl.BlockSpec((D, tv), lambda i, j: (0, j)),   # unembed tile (streamed)
            ],
            out_specs=pl.BlockSpec((tb, tv), lambda i, j: (i, j)),
            scratch_shapes=[pltpu.VMEM((tb, D), compute_dtype)],
        ),
        compiler_params=pltpu.CompilerParams(
            dimension_semantics=("parallel", "arbitrary"),
            vmem_limit_bytes=vmem_limit,
        ),
    )(e, w1_t, b1_2d, wu_t)
    return out


def _reference_forward(x_ids, embed1_w, embed2_w, l1_w, l1_b, unembed_w):
    e = embed1_w[x_ids[:, 0]] + embed2_w[x_ids[:, 1]]
    h = jax.nn.relu(e @ l1_w.T + l1_b)
    return h @ unembed_w.T


if __name__ == "__main__":
    # Small, lane-aligned config: n_vocab=512, d_model=128, batch=256.
    n_vocab, d_hidden, batch = 512, 128, 256

    key = jax.random.PRNGKey(0)
    k_e1, k_e2, k_unemb, k_w1, k_b1, k_x = jax.random.split(key, 6)

    # Deterministic parameter init mirroring the PyTorch __init__ scaling.
    embed1_w = jax.random.normal(k_e1, (n_vocab, d_hidden), jnp.float32) / (
        (d_hidden // 2) ** 0.5)
    embed2_w = jax.random.normal(k_e2, (n_vocab, d_hidden), jnp.float32) / (
        (d_hidden // 2) ** 0.5)
    unembed_w = jax.random.normal(k_unemb, (n_vocab, d_hidden), jnp.float32) / (
        d_hidden ** 0.5)
    bound = 1.0 / (d_hidden ** 0.5)          # nn.Linear default init bound
    l1_w = jax.random.uniform(k_w1, (d_hidden, d_hidden), jnp.float32, -bound, bound)
    l1_b = jax.random.uniform(k_b1, (d_hidden,), jnp.float32, -bound, bound)

    # Token ids: (B, 2), matching the forward's x[:, 0] / x[:, 1] indexing.
    x_ids = jax.random.randint(k_x, (batch, 2), 0, n_vocab, dtype=jnp.int32)

    out = mymodel_x_forward(x_ids, embed1_w, embed2_w, l1_w, l1_b, unembed_w)
    out = jax.block_until_ready(out)

    ref = _reference_forward(x_ids, embed1_w, embed2_w, l1_w, l1_b, unembed_w)
    assert out.shape == (batch, n_vocab)
    # bf16 weights/activations with f32 accumulation -> loosened tolerance.
    assert jnp.allclose(out, ref, atol=3e-2, rtol=3e-2), (
        float(jnp.max(jnp.abs(out - ref))))

    print("KERNEL_OK")
</pallas_src>

<mosaic_0001>
module attributes {stable_mosaic.version = 11 : i64} {
  func.func @_mlp_unembed_kernel(%arg0: i32, %arg1: i32, %arg2: memref<128x128xbf16, #tpu.memory_space<vmem>>, %arg3: memref<128x128xbf16, #tpu.memory_space<vmem>>, %arg4: memref<1x128xf32, #tpu.memory_space<vmem>>, %arg5: memref<128x256xbf16, #tpu.memory_space<vmem>>, %arg6: memref<128x256xf32, #tpu.memory_space<vmem>>, %arg7: memref<128x128xbf16, #tpu.memory_space<vmem>>) attributes {dimension_semantics = [#tpu.dimension_semantics<parallel>, #tpu.dimension_semantics<arbitrary>], iteration_bounds = array<i64: 2, 2>, scalar_prefetch = 0 : i64, scratch_operands = 1 : i64, tpu.core_type = #tpu.core_type<tc>, window_params = [{transform_indices = @transform_0, window_bounds = array<i64: 128, 128>}, {pipeline_mode = #tpu.pipeline_mode<synchronous>, transform_indices = @transform_1, window_bounds = array<i64: 128, 128>}, {pipeline_mode = #tpu.pipeline_mode<synchronous>, transform_indices = @transform_2, window_bounds = array<i64: 1, 128>}, {transform_indices = @transform_3, window_bounds = array<i64: 128, 256>}, {transform_indices = @transform_4, window_bounds = array<i64: 128, 256>}]} {
    %c0_i32 = arith.constant 0 : i32
    %0 = arith.cmpi eq, %arg1, %c0_i32 : i32
    %1 = arith.extui %0 : i1 to i32
    %c0_i32_0 = arith.constant 0 : i32
    %2 = arith.cmpi ne, %1, %c0_i32_0 : i32
    scf.if %2 {
      %c0_6 = arith.constant 0 : index
      %c0_7 = arith.constant 0 : index
      %7 = vector.load %arg2[%c0_6, %c0_7] : memref<128x128xbf16, #tpu.memory_space<vmem>>, vector<128x128xbf16>
      %c0_8 = arith.constant 0 : index
      %c0_9 = arith.constant 0 : index
      %8 = vector.load %arg3[%c0_8, %c0_9] : memref<128x128xbf16, #tpu.memory_space<vmem>>, vector<128x128xbf16>
      %cst_10 = arith.constant dense<0.000000e+00> : vector<128x128xf32>
      %9 = tpu.matmul %7, %8, %cst_10 {dimension_numbers = #tpu.dot_dimension_numbers<[1], [0], [0], [1], [0, 0, 1, 1], [], []>} : vector<128x128xbf16>, vector<128x128xbf16>, vector<128x128xf32> -> vector<128x128xf32>
      %c0_11 = arith.constant 0 : index
      %c0_12 = arith.constant 0 : index
      %10 = vector.load %arg4[%c0_11, %c0_12] : memref<1x128xf32, #tpu.memory_space<vmem>>, vector<1x128xf32>
      %11 = vector.broadcast %10 : vector<1x128xf32> to vector<128x128xf32>
      %12 = arith.addf %9, %11 : vector<128x128xf32>
      %cst_13 = arith.constant 0.000000e+00 : f32
      %13 = vector.broadcast %cst_13 : f32 to vector<128x128xf32>
      %14 = arith.maximumf %12, %13 : vector<128x128xf32>
      %15 = arith.truncf %14 : vector<128x128xf32> to vector<128x128xbf16>
      %c0_14 = arith.constant 0 : index
      %c0_15 = arith.constant 0 : index
      %16 = vector.load %arg7[%c0_14, %c0_15] : memref<128x128xbf16, #tpu.memory_space<vmem>>, vector<128x128xbf16>
      tpu.vector_store %arg7[%c0_14, %c0_15], %15 {strides = array<i32>} : memref<128x128xbf16, #tpu.memory_space<vmem>>, vector<128x128xbf16>,
    } else {
    }
    %c0 = arith.constant 0 : index
    %c0_1 = arith.constant 0 : index
    %3 = vector.load %arg7[%c0, %c0_1] : memref<128x128xbf16, #tpu.memory_space<vmem>>, vector<128x128xbf16>
    %c0_2 = arith.constant 0 : index
    %c0_3 = arith.constant 0 : index
    %4 = vector.load %arg5[%c0_2, %c0_3] : memref<128x256xbf16, #tpu.memory_space<vmem>>, vector<128x256xbf16>
    %cst = arith.constant dense<0.000000e+00> : vector<128x256xf32>
    %5 = tpu.matmul %3, %4, %cst {dimension_numbers = #tpu.dot_dimension_numbers<[1], [0], [0], [1], [0, 0, 1, 1], [], []>} : vector<128x128xbf16>, vector<128x256xbf16>, vector<128x256xf32> -> vector<128x256xf32>
    %c0_4 = arith.constant 0 : index
    %c0_5 = arith.constant 0 : index
    %6 = vector.load %arg6[%c0_4, %c0_5] : memref<128x256xf32, #tpu.memory_space<vmem>>, vector<128x256xf32>
    tpu.vector_store %arg6[%c0_4, %c0_5], %5 {strides = array<i32>} : memref<128x256xf32, #tpu.memory_space<vmem>>, vector<128x256xf32>,
    return
  }
  func.func @transform_0(%arg0: i32, %arg1: i32) -> (i32, i32) {
    %c0_i32 = arith.constant 0 : i32
    %c0_i32_0 = arith.constant 0 : i32
    return %arg0, %c0_i32 : i32, i32
  }
  func.func @transform_1(%arg0: i32, %arg1: i32) -> (i32, i32) {
    %c0_i32 = arith.constant 0 : i32
    %c0_i32_0 = arith.constant 0 : i32
    %c0_i32_1 = arith.constant 0 : i32
    return %c0_i32, %c0_i32_0 : i32, i32
  }
  func.func @transform_2(%arg0: i32, %arg1: i32) -> (i32, i32) {
    %c0_i32 = arith.constant 0 : i32
    %c0_i32_0 = arith.constant 0 : i32
    %c0_i32_1 = arith.constant 0 : i32
    return %c0_i32, %c0_i32_0 : i32, i32
  }
  func.func @transform_3(%arg0: i32, %arg1: i32) -> (i32, i32) {
    %c0_i32 = arith.constant 0 : i32
    %c0_i32_0 = arith.constant 0 : i32
    return %c0_i32, %arg1 : i32, i32
  }
  func.func @transform_4(%arg0: i32, %arg1: i32) -> (i32, i32) {
    %c0_i32 = arith.constant 0 : i32
    return %arg0, %arg1 : i32, i32
  }
}

</mosaic_0001>

<bundles_post_ra>
// kernel: tpu_custom_call.1
= control target key start
LH: loop header
LB: loop body
LE: loop exit
PB: predicated region body
PF: predicated region fallthrough
CT: control target
= control target key end

     0   :  { %s2016_s0 = inlined_call_operand.hbm [shape: bf16[256,128], index: 0, kind: input, shape index: {}]   ;;  %s2017_s1 = inlined_call_operand.hbm [shape: bf16[128,128], index: 1, kind: input, shape index: {}]   ;;  %s2018_s2 = inlined_call_operand.vmem [shape: f32[1,128], index: 2, kind: input, shape index: {}]   ;;  %s2019_s3 = inlined_call_operand.hbm [shape: bf16[128,512], index: 3, kind: input, shape index: {}]   ;;  %s2020_s4 = inlined_call_operand.hbm [shape: f32[256,512], index: 4, kind: output, shape index: {}]  }
   0x1   :  { %2038 = sst [smem:[#allocation25_spill]] %s2016_s0 }
   0x2   :  { %2039 = sst [smem:[#allocation26_spill]] %s2018_s2 }
   0x3   :  { %2040 = sst [smem:[#allocation27_spill]] %s2020_s4 }
   0x4   :  { %9 = vsyncpa [#allocation4], 0 }
   0x5   :  { %11 = vsyncpa [#allocation4 + $0x1], 0 }
   0x6   :  { %12 = vsyncpa [#allocation7], 0 }
   0x7   :  { %13 = vsyncpa [#allocation5], 0 }
   0x8   :  { %15 = vsyncpa [#allocation5 + $0x1], 0  ;;  %s1551_s15 = smov 0   ;;  %s1553_s16 = smov 0  }
   0x9   :  { %s1555_s17 = smov 0   ;;  %s1557_s18 = smov 0  }
   0xa   :  { %s1559_s19 = smov 0   ;;  %s1561_s20 = smov 0  }
   0xb   :  { %s1563_s21 = smov 0   ;;  %s1565_s22 = smov 0  }
   0xc   :  { %s1567_s23 = smov 0   ;;  %s1569_s24 = smov 0  }
   0xd   :  { %s1571_s25 = smov 0   ;;  %s1573_s26 = smov 0  }
   0xe   :  { %s1575_s27 = smov 0   ;;  %s1577_s28 = smov 0  }
   0xf LB: > { %2041 = sst [smem:[#allocation14_spill]] %s1479_s20  ;;  %s30_s29 = sadd.s32 1, %s1503_s26  ;;  %s1511_s28 = sphi %s1577_s28, %s21_s28   ;;  %s1507_s27 = sphi %s1575_s27, %s2089_s27   ;;  %s1503_s26 = sphi %s1573_s26, %s2088_s26   ;;  %s1499_s25 = sphi %s1571_s25, %s2098_s25   ;;  %s1495_s24 = sphi %s1569_s24, %s2097_s24   ;;  %s1491_s23 = sphi %s1567_s23, %s2085_s23   ;;  %s1487_s22 = sphi %s1565_s22, %s2096_s22   ;;  %s1483_s21 = sphi %s1563_s21, %s2095_s21   ;;  %s1479_s20 = sphi %s1561_s20, %s2083_s20   ;;  %s1475_s19 = sphi %s1559_s19, %s2094_s19   ;;  %s1471_s18 = sphi %s1557_s18, %s2093_s18   ;;  %s1467_s17 = sphi %s1555_s17, %s2092_s17   ;;  %s1463_s16 = sphi %s1553_s16, %s2091_s16   ;;  %s1459_s15 = sphi %s1551_s15, %s2090_s15  }
  0x10   : > { %2042 = sst [smem:[#allocation15_spill]] %s1491_s23  ;;  %s33_s30 = sadd.s32 1, %s1507_s27 }
  0x11   : > { %2043 = sst [smem:[#allocation16_spill]] %s1495_s24  ;;  %p31_p0 = scmp.ge.s32.totalorder %s30_s29, 2 }
  0x12   : > { %2044 = sst [smem:[#allocation17_spill]] %s1499_s25  ;;  %s40_s5 = sadd.s32 1, %s1491_s23 }
  0x13   : > { %2045 = sst [smem:[#allocation18_spill]] %s1503_s26  ;;  %p47_p1 = scmp.ne.s32.totalorder %s1491_s23, %s1487_s22 }
  0x14   : > { %2046 = sst [smem:[#allocation19_spill]] %s1507_s27  ;;  %p2025_p2 = scmp.eq.s32.totalorder %s1511_s28, 0 }
  0x15   : > { %s2100_s29 = smov (%p31_p0, %s30_s29), 0  ;;  %s2102_s30 = smov (!%p31_p0, %s33_s30), %s1507_s27 }
  0x16   : > { %2047 = sst [smem:[#allocation20_spill]] %s2100_s29  ;;  %p1632_p3 = por %p2025_p2, %p47_p1 }
  0x17   : > { %s1638_s7 = ssub.s32 %s1503_s26, %s2100_s29  ;;  %p35_p4 = scmp.ge.s32.totalorder %s2102_s30, 2 }
  0x18   : > { %p106_p5 = scmp.eq.s32.totalorder %s1638_s7, 0  ;;  %s136_s8 = sadd.s32 1, %s1467_s17 }
  0x19   : > { %s2104_s30 = smov (%p35_p4, %s2102_s30), 0  ;;  %p2024_p6 = scmp.lt.s32.totalorder %s1511_s28, 4 }
  0x1a   : > { %2049 = sst [smem:[#allocation21_spill]] %s2104_s30  ;;  %s37_s9 = ssub.s32 %s1507_s27, %s2104_s30 }
  0x1b   : > { %p38_p7 = scmp.eq.s32.totalorder %s37_s9, 0  ;;  %s133_s10 = sor.u32 %s1638_s7, %s37_s9 }
  0x1c   : > { %p134_p8 = scmp.eq.s32.totalorder %s133_s10, 0  ;;  %s189_s11 = sand.u32 1, %s1511_s28  }
  0x1d   : > { %s1650_s12 = scalar_select %p38_p7, %s1491_s23, %s40_s5  }
  0x1e   : > { %s1653_s13 = scalar_select %p134_p8, %s1467_s17, %s136_s8  }
  0x1f   : > { %2050 = sst [smem:[#allocation22_spill]] %s1650_s12  ;;  %s191_s14 = sand.u32 1, %s1491_s23  }
  0x20   : > { %2051 = sst [smem:[#allocation23_spill]] %s1653_s13  ;;  %s943_s29 = sshll.u32 %s191_s14, 6 }
  0x21   : > { %s995_s4 = sshll.u32 %s1507_s27, 10  ;;  %s2052_s0 = sld [smem:[#allocation25_spill]] }
  0x22   : > { %s193_s30 = scalar_lea.vmem [#allocation3], %s943_s29  ;;  %p1666_p9 = pnand %p2024_p6, %p1632_p3 }
  0x23   : > { %s200_s9 = sshll.u32 %s193_s30, 4  ;;  %s1672_s8 = scalar_lea.sflag [#allocation4], %s189_s11  ;;  %s1670_s9 = int_to_ptr.vmem [resolvable:$true] %s200_s9 }
  0x24   : > { %p1271_p11 = pneg %p1666_p9 }
  0x27   : > { %s1660_s24 = scalar_lea.hbm %s2052_s0, %s995_s4  ;;  %s1274_s29 = scalar_lea.hbm %s2052_s0, 2048 }
  0x28   : > { %s1269_s2 = scalar_lea.hbm %s1660_s24, 1024  ;;  %p1275_p0 = scmp.lt.u32.totalorder %s1660_s24, %s2052_s0 }
  0x29   : > { %p1270_p10 = scmp.ne.s32.totalorder %s1660_s24, %s1269_s2  ;;  %p1276_p1 = scmp.lt.u32.totalorder %s1274_s29, %s1269_s2 }
  0x2a   : > { %p1278_p4 = scmp.lt.u32.totalorder %s1269_s2, %s1660_s24 }
  0x2b   : > { %p1272_p12 = pnand %p1271_p11, %p1270_p10  ;;  %p1277_p3 = por %p1276_p1, %p1275_p0 }
  0x2d   : > { %p1273_p13 = pneg %p1272_p12  ;;  %p1279_p7 = por %p1278_p4, %p1277_p3 }
  0x2f   : > { %p1280_p8 = pnand %p1279_p7, %p1273_p13 }
  0x31   : > { %1283 = shalt.err (!%p1280_p8)
}
  0x32   : > { %s1284_s10 = scalar_lea.vmem %s1670_s9, 1024  ;;  %s1513_s11 = smov [#allocation3]  }
  0x33   : > { %p1285_p10 = scmp.ne.s32.totalorder %s1670_s9, %s1284_s10  ;;  %s1289_s14 = sshll.u32 %s1513_s11, 4  ;;  %s1290_s14 = int_to_ptr.vmem [resolvable:$false] %s1289_s14 }
  0x34   : > { %s1291_s4 = scalar_lea.vmem %s1290_s14, 2048  ;;  %p1292_p2 = scmp.lt.s32.totalorder %s1670_s9, %s1290_s14 }
  0x35   : > { %p1287_p12 = pnand %p1285_p10, %p1271_p11  ;;  %p1293_p0 = scmp.lt.s32.totalorder %s1291_s4, %s1284_s10 }
  0x37   : > { %p1288_p6 = pneg %p1287_p12  ;;  %p1294_p1 = por %p1293_p0, %p1292_p2 }
  0x39   : > { %p1295_p3 = pnand %p1294_p1, %p1288_p6 }
  0x3b   : > { %1298 = shalt.err (!%p1295_p3)
}
  0x3c   : > { %s2026_s2 = smov 64   ;;  %s2027_s25 = smov 4  }
  0x3d   : > { %1095 = dma.hbm_to_vmem [thread:$0]  (!%p1666_p9), %s1660_s24, 1024, %s1670_s9, %s1672_s8, %s2026_s2, %s2026_s2, %s2027_s25  }
  0x3e   : > { %s1704_s29 = sadd.s32 4294967295, %s1511_s28   ;;  %s939_s30 = sadd.s32 4294967294, %s1511_s28  }
  0x3f   : > { %p53_p2 = scmp.ne.s32.totalorder %s1487_s22, %s1483_s21  ;;  %p2032_p6 = scmp.eq.s32.totalorder %s1704_s29, 0 }
  0x40   : > { %s108_s6 = sadd.s32 1, %s1479_s20  ;;  %p115_p11 = scmp.ne.s32.totalorder %s1479_s20, %s1475_s19 }
  0x41   : > { %p1715_p13 = por %p2032_p6, %p53_p2  ;;  %p121_p4 = scmp.ne.s32.totalorder %s1475_s19, %s1471_s18 }
  0x42   : > { %s1724_s24 = scalar_select %p106_p5, %s1479_s20, %s108_s6  }
  0x43   : > { %s2054_s5 = scalar_select %p1715_p13, 1, 0 }
  0x44   : > { %2055 = sst [smem:[#allocation24_spill]] %s1724_s24  ;;  %p2056_p9 = scmp.eq.s32.totalorder %s1511_s28, 0 }
  0x45   : > { %p1734_p8 = por %p121_p4, %p2032_p6  ;;  %p146_p10 = scmp.ne.s32.totalorder %s1467_s17, %s1463_s16 }
  0x46   : > { %p1728_p7 = por %p115_p11, %p2056_p9  ;;  %p147_p12 = scmp.eq.s32.totalorder %s1704_s29, 3 }
  0x47   : > { %s2058_s21 = scalar_select %p1734_p8, 1, 0 }
  0x48   : > { %p152_p0 = scmp.ne.s32.totalorder %s1463_s16, %s1459_s15  ;;  %p153_p1 = scmp.eq.s32.totalorder %s939_s30, 3 }
  0x49   : > { %p1743_p5 = por %p147_p12, %p146_p10  ;;  %p940_p3 = scmp.ge.s32.totalorder %s1511_s28, 1 }
  0x4a   : > { %p1748_p2 = por %p153_p1, %p152_p0  ;;  %p160_p11 = scmp.lt.s32.totalorder %s1511_s28, 5 }
  0x4b   : > { %s2059_s18 = scalar_select %p1743_p5, 1, 0 }
  0x4c   : > { %s2060_s7 = scalar_select %p1748_p2, 1, 0 }
  0x4d   : > { %p1753_p4 = pnand %p940_p3, %p160_p11  ;;  %s1516_s11 = smov [#allocation6]  }
  0x4e   : > { %s172_s14 = sshll.u32 %s1516_s11, 4  ;;  %p2062_p9 = scmp.lt.s32.totalorder %s1511_s28, 4  ;;  %s1757_s14 = int_to_ptr.vmem [resolvable:$true] %s172_s14 }
  0x4f   : > { %s2061_s10 = scalar_select %p1753_p4, 1, 0 }
  0x50   : > { %p1763_p10 = pnand %p2062_p9, %p1728_p7  ;;  %p1088_p12 = pneg %p1753_p4 }
  0x51   : > { %s212_s30 = sand.u32 1, %s1479_s20   ;;  %s996_s25 = sshll.u32 %s1503_s26, 7 }
  0x52   : > { %s2063_s4 = scalar_select %p1763_p10, 1, 0 }
  0x53   : > { %s946_s6 = sshll.u32 %s212_s30, 7  ;;  %p1772_p0 = pnand %p1088_p12, %p2032_p6 }
  0x54   : > { %s214_s11 = scalar_lea.vmem [#allocation8], %s946_s6  ;;  %s1780_s12 = scalar_lea.hbm %s2019_s3, %s996_s25 }
  0x55   : > { %s221_s0 = sshll.u32 %s214_s11, 4  ;;  %s1299_s13 = scalar_lea.hbm %s2017_s1, 1024  ;;  %s1806_s0 = int_to_ptr.vmem [resolvable:$true] %s221_s0 }
  0x56   : > { %p1300_p7 = scmp.ne.s32.totalorder %s2017_s1, %s1299_s13  ;;  %p1301_p1 = pneg %p1772_p0 }
  0x57   : > { %p1306_p9 = scmp.lt.u32.totalorder %s1299_s13, %s2017_s1 }
  0x58   : > { %p1302_p3 = pnand %p1301_p1, %p1300_p7 }
  0x5a   : > { %p1303_p11 = pneg %p1302_p3 }
  0x5c   : > { %p1308_p12 = pnand %p1306_p9, %p1303_p11 }
  0x5e   : > { %1311 = shalt.err (!%p1308_p12)
}
  0x5f   : > { %s1312_s27 = scalar_lea.vmem %s1757_s14, 1024  ;;  %p1320_p8 = scmp.lt.s32.totalorder %s1757_s14, %s1757_s14 }
  0x60   : > { %p1313_p6 = scmp.ne.s32.totalorder %s1757_s14, %s1312_s27  ;;  %p1321_p13 = scmp.lt.s32.totalorder %s1312_s27, %s1312_s27 }
  0x62   : > { %p1315_p2 = pnand %p1313_p6, %p1301_p1  ;;  %p1322_p4 = por %p1321_p13, %p1320_p8 }
  0x64   : > { %p1316_p5 = pneg %p1315_p2 }
  0x66   : > { %p1323_p10 = pnand %p1322_p4, %p1316_p5 }
  0x68   : > { %1326 = shalt.err (!%p1323_p10)
}
  0x69   : > { %s2065_s20 = smov 4   ;;  %s2066_s23 = smov 64  }
  0x6a   : > { %1091 = dma.hbm_to_vmem [thread:$0]  (!%p1772_p0), %s2017_s1, 1024, %s1757_s14, [#allocation7], %s2066_s23, %s2066_s23, %s2065_s20  }
  0x6b   : > { %s1327_s25 = scalar_lea.hbm %s1780_s12, 2048  ;;  %p2067_p13 = scmp.ne.s32.totalorder %s2063_s4, 0 }
  0x6c   : > { %p1328_p6 = scmp.ne.s32.totalorder %s1780_s12, %s1327_s25  ;;  %s1332_s11 = scalar_lea.hbm %s2019_s3, 4096 }
  0x6d   : > { %p1329_p8 = pneg %p2067_p13  ;;  %p1333_p4 = scmp.lt.u32.totalorder %s1780_s12, %s2019_s3 }
  0x6e   : > { %p1334_p10 = scmp.lt.u32.totalorder %s1332_s11, %s1327_s25  ;;  %p1336_p7 = scmp.lt.u32.totalorder %s1327_s25, %s1780_s12 }
  0x6f   : > { %p1330_p5 = pnand %p1329_p8, %p1328_p6 }
  0x70   : > { %p1335_p0 = por %p1334_p10, %p1333_p4 }
  0x71   : > { %p1331_p2 = pneg %p1330_p5 }
  0x72   : > { %p1337_p1 = por %p1336_p7, %p1335_p0 }
  0x74   : > { %p1338_p3 = pnand %p1337_p1, %p1331_p2 }
  0x76   : > { %1341 = shalt.err (!%p1338_p3)
}
  0x77   : > { %s1342_s14 = scalar_lea.vmem %s1806_s0, 2048  ;;  %s1517_s6 = smov [#allocation8]  }
  0x78   : > { %p1343_p11 = scmp.ne.s32.totalorder %s1806_s0, %s1342_s14  ;;  %s1347_s27 = sshll.u32 %s1517_s6, 4  ;;  %s1348_s27 = int_to_ptr.vmem [resolvable:$false] %s1347_s27 }
  0x79   : > { %s1349_s20 = scalar_lea.vmem %s1348_s27, 4096  ;;  %p1350_p6 = scmp.lt.s32.totalorder %s1806_s0, %s1348_s27 }
  0x7a   : > { %p1345_p9 = pnand %p1343_p11, %p1329_p8  ;;  %p1351_p5 = scmp.lt.s32.totalorder %s1349_s20, %s1342_s14 }
  0x7c   : > { %p1346_p12 = pneg %p1345_p9  ;;  %p1352_p4 = por %p1351_p5, %p1350_p6 }
  0x7e   : > { %p1353_p10 = pnand %p1352_p4, %p1346_p12 }
  0x80   : > { %1356 = shalt.err (!%p1353_p10)
}
  0x81   : > { %s1518_s23 = smov 256   ;;  %s1519_s26 = smov 128  }
  0x82   : > { %s1520_s13 = smov 8   ;;  %p2068_p8 = scmp.ne.s32.totalorder %s2061_s10, 0 }
  0x83   : > { %1098 = dma.hbm_to_vmem [thread:$0]  (!%p2067_p13), %s1780_s12, 2048, %s1806_s0, %s1672_s8, %s1518_s23, %s1519_s26, %s1520_s13  }
  0x84   : > { %233 = sbr.rel (%p2068_p8) target bundleno = 706 (0x2c2), region = 36  ;;  %s235_s25 = sand.u32 (!%p2068_p8), 1, %s1704_s29  }
  0x85   : > { %s237_s2 = sand.u32 (!%p2068_p8), 1, %s1487_s22   ;;  %s236_s11 = scalar_lea.sflag (!%p2068_p8), [#allocation4], %s235_s25 }
  0x86   : > { %s950_s24 = sshll.u32 (!%p2068_p8), %s237_s2, 6  ;;  %p2069_p2 = scmp.ne.s32.totalorder (!%p2068_p8), %s2054_s5, 0 }
  0x87   : > { %s1838_s9 = scalar_lea.vmem (!%p2068_p8), [#allocation3], %s950_s24 }
  0x8b   : > { %1442 = dma.done.wait (%p2069_p2), %s236_s11, 1024  }
  0x8c   : > { %1444 = vsyncadd (%p2069_p2), %s236_s11, 4294966272  ;;  %p2070_p0 = scmp.eq.s32.totalorder %s1704_s29, 0 }
  0x8e   : > { %1446 = dma.done.wait (%p2070_p0), [#allocation7], 1024   ;;  %p2071_p13 = pmov %p2070_p0 }
  0x8f   : > { %s250_s0 = sand.u32 1, %s1475_s19   ;;  %p2072_p7 = scmp.ne.s32.totalorder %s2058_s21, 0 }
  0x90   : > { %1448 = vsyncadd (%p2071_p13), [#allocation7], 4294966272  ;;  %s952_s12 = sshll.u32 %s250_s0, 7 }
  0x91   : > { %s1849_s8 = scalar_lea.vmem [#allocation8], %s952_s12 }
  0x92   : > { %1450 = dma.done.wait (%p2072_p7), %s236_s11, 2048  }
  0x93   : > { %1452 = vsyncadd (%p2072_p7), %s236_s11, 4294965248  ;;  %s279_s5 = sand.u32 1, %s1463_s16   ;;  %s2073_s29 = sld [smem:[#allocation16_spill]] }
  0x94   : > { %s953_s10 = sshll.u32 %s279_s5, 8 }
  0x95   : > { %s1858_s4 = scalar_lea.vmem [#allocation9], %s953_s10 }
  0x99   : > { %p954_p1 = scmp.ne.s32.totalorder %s2073_s29, 0 }
  0x9a   : > { %v1229_v0 = vld [vmem:[#allocation6] sm:$0xff] (!%p954_p1)   ;;  %v1230_v1 = vld [vmem:[#allocation6 + $0x8] sm:$0xff] (!%p954_p1)   ;;  %v1231_v2 = vld [vmem:[#allocation6 + $0x10] sm:$0xff] (!%p954_p1)   ;;  %s2074_s14 = sld [smem:[#allocation26_spill]] (!%p954_p1) }
  0x9b   : > { %290 = sbr.rel (%p954_p1) target bundleno = 417 (0x1a1), region = 52  ;;  %1014 = vmatprep.subr.bf16.mxu0 (!%p954_p1), %v1229_v0  ;;  %1046 = vmatprep.subr.bf16.mxu1 (!%p954_p1), %v1229_v0  ;;  %v1232_v3 = vld [vmem:[#allocation6 + $0x18] sm:$0xff] (!%p954_p1)   ;;  %v1237_v4 = vld [vmem:[%s1838_s9] sm:$0xff] (!%p954_p1)   ;;  %v1234_v7 = vld [vmem:[#allocation6 + $0x28] sm:$0xff] (!%p954_p1)  }
  0x9c   : > { %1015 = vmatpush3.bf16.msra.mxu0 (!%p954_p1), %v1229_v0  ;;  %1054 = vmatpush3.bf16.msra.mxu1 (!%p954_p1), %v1229_v0  ;;  %v1238_v5 = vld [vmem:[%s1838_s9 + $0x20] sm:$0xff] (!%p954_p1)   ;;  %v1235_v8 = vld [vmem:[#allocation6 + $0x30] sm:$0xff] (!%p954_p1)   ;;  %v1236_v9 = vld [vmem:[#allocation6 + $0x38] sm:$0xff] (!%p954_p1)  }
  0x9d   : > { %1016 = vmatprep.subr.bf16.mxu0 (!%p954_p1), %v1230_v1  ;;  %1047 = vmatprep.subr.bf16.mxu1 (!%p954_p1), %v1230_v1  ;;  %v1233_v6 = vld [vmem:[#allocation6 + $0x20] sm:$0xff] (!%p954_p1)   ;;  %v1239_v10 = vld [vmem:[%s1838_s9 + $0x8] sm:$0xff] (!%p954_p1)   ;;  %v1241_v12 = vld [vmem:[%s1838_s9 + $0x10] sm:$0xff] (!%p954_p1)  }
  0x9e   : > { %1030 = vmatprep.mubr.bf16.mxu0 (!%p954_p1), %v1237_v4  ;;  %1038 = vmatprep.mubr.bf16.mxu1 (!%p954_p1), %v1238_v5  ;;  %v1240_v11 = vld [vmem:[%s1838_s9 + $0x28] sm:$0xff] (!%p954_p1)   ;;  %v1242_v13 = vld [vmem:[%s1838_s9 + $0x30] sm:$0xff] (!%p954_p1)   ;;  %v1243_v14 = vld [vmem:[%s1838_s9 + $0x18] sm:$0xff] (!%p954_p1)  }
  0x9f   : > { %v1244_v15 = vld [vmem:[%s1838_s9 + $0x38] sm:$0xff] (!%p954_p1)  }
  0xa0   : > { %1017 = vmatpush3.bf16.msra.mxu0 (!%p954_p1), %v1230_v1  ;;  %1055 = vmatpush3.bf16.msra.mxu1 (!%p954_p1), %v1230_v1  ;;  %v955_v16 = vld [vmem:[%s2074_s14] ss:$0 sm:$0xff] (!%p954_p1) }
  0xa1   : > { %1018 = vmatprep.subr.bf16.mxu0 (!%p954_p1), %v1231_v2  ;;  %1048 = vmatprep.subr.bf16.mxu1 (!%p954_p1), %v1231_v2 }
  0xa4   : > { %1019 = vmatpush3.bf16.msra.mxu0 %v1231_v2  ;;  %1056 = vmatpush3.bf16.msra.mxu1 %v1231_v2 }
  0xa5   : > { %1020 = vmatprep.subr.bf16.mxu0 %v1232_v3  ;;  %1049 = vmatprep.subr.bf16.mxu1 %v1232_v3 }
  0xa8   : > { %1021 = vmatpush3.bf16.msra.mxu0 %v1232_v3  ;;  %1057 = vmatpush3.bf16.msra.mxu1 %v1232_v3 }
  0xa9   : > { %1022 = vmatprep.subr.bf16.mxu0 %v1233_v6  ;;  %1050 = vmatprep.subr.bf16.mxu1 %v1233_v6 }
  0xac   : > { %1023 = vmatpush3.bf16.msra.mxu0 %v1233_v6  ;;  %1058 = vmatpush3.bf16.msra.mxu1 %v1233_v6 }
  0xad   : > { %1024 = vmatprep.subr.bf16.mxu0 %v1234_v7  ;;  %1051 = vmatprep.subr.bf16.mxu1 %v1234_v7 }
  0xb0   : > { %1025 = vmatpush3.bf16.msra.mxu0 %v1234_v7  ;;  %1059 = vmatpush3.bf16.msra.mxu1 %v1234_v7 }
  0xb1   : > { %1026 = vmatprep.subr.bf16.mxu0 %v1235_v8  ;;  %1052 = vmatprep.subr.bf16.mxu1 %v1235_v8 }
  0xb4   : > { %1027 = vmatpush3.bf16.msra.mxu0 %v1235_v8  ;;  %1060 = vmatpush3.bf16.msra.mxu1 %v1235_v8 }
  0xb5   : > { %1028 = vmatprep.subr.bf16.mxu0 %v1236_v9  ;;  %1053 = vmatprep.subr.bf16.mxu1 %v1236_v9 }
  0xb8   : > { %1029 = vmatpush3.bf16.msra.mxu0 %v1236_v9  ;;  %1061 = vmatpush3.bf16.msra.mxu1 %v1236_v9 }
  0xbb   : > { %1031 = vmatmul.mubr.bf16.vlgmr.msra.gmra.mrb[0].mxu0 %v1239_v10  ;;  %1039 = vmatmul.mubr.bf16.vlgmr.msra.gmra.mrb[0].mxu1 %v1240_v11 }
  0xbc   : > { %1034 = vmatprep.mubr.bf16.mxu0 %v1241_v12  ;;  %1042 = vmatprep.mubr.bf16.mxu1 %v1242_v13 }
  0xc3   : > { %1035 = vmatmul.mubr.bf16.gmra.mrb[4].mxu0 %v1243_v14  ;;  %1043 = vmatmul.mubr.bf16.gmra.mrb[4].mxu1 %v1244_v15 }
 0x18e   : > { %v1032_v17 = vpop.f32.mrb[0].mxu0  ;;  %v1040_v18 = vpop.f32.mrb[0].mxu1 }
 0x18f   : > { %v469_v19 = vadd.f32 %v1032_v17, %v955_v16  ;;  %v501_v20 = vadd.f32 %v1040_v18, %v955_v16  ;;  %v460_v21 = vpop.f32.mrb[1].mxu0  ;;  %v492_v22 = vpop.f32.mrb[1].mxu1 }
 0x190   : > { %v461_v23 = vadd.f32 %v955_v16, %v460_v21  ;;  %v493_v24 = vadd.f32 %v955_v16, %v492_v22  ;;  %v1033_v25 = vpop.f32.mrb[2].mxu0  ;;  %v1041_v26 = vpop.f32.mrb[2].mxu1 }
 0x191   : > { %v472_v27 = vadd.f32 %v1033_v25, %v955_v16  ;;  %v504_v28 = vadd.f32 %v1041_v26, %v955_v16  ;;  %v463_v29 = vpop.f32.mrb[3].mxu0  ;;  %v495_v30 = vpop.f32.mrb[3].mxu1  ;;  %v525_v33 = vmax.f32 %v469_v19, 0.0  ;;  %v533_v34 = vmax.f32 %v501_v20, 0.0 }
 0x192   : > { %v464_v31 = vadd.f32 %v955_v16, %v463_v29  ;;  %v496_v32 = vadd.f32 %v955_v16, %v495_v30  ;;  %v523_v37 = vmax.f32 %v461_v23, 0.0  ;;  %v531_v38 = vmax.f32 %v493_v24, 0.0 }
 0x193   : > { %v526_v35 = vmax.f32 %v472_v27, 0.0  ;;  %v534_v36 = vmax.f32 %v504_v28, 0.0 }
 0x194   : > { %v524_v39 = vmax.f32 %v464_v31, 0.0  ;;  %v532_v40 = vmax.f32 %v496_v32, 0.0 }
 0x195   : > { %v540_v41 = vpack.c.bf16 %v526_v35, %v525_v33  ;;  %v544_v42 = vpack.c.bf16 %v534_v36, %v533_v34 }
 0x196   : > { %v539_v43 = vpack.c.bf16 %v524_v39, %v523_v37  ;;  %v543_v44 = vpack.c.bf16 %v532_v40, %v531_v38  ;;  %v1036_v45 = vpop.f32.mrb[4].mxu0  ;;  %v1044_v46 = vpop.f32.mrb[4].mxu1 }
 0x197   : > { %548 = vst [vmem:[#allocation2 + $0x8] sm:$0xff] %v540_v41  ;;  %552 = vst [vmem:[#allocation2 + $0x28] sm:$0xff] %v544_v42  ;;  %v485_v47 = vadd.f32 %v1036_v45, %v955_v16  ;;  %v517_v48 = vadd.f32 %v1044_v46, %v955_v16  ;;  %v476_v49 = vpop.f32.mrb[5].mxu0  ;;  %v508_v50 = vpop.f32.mrb[5].mxu1 }
 0x198   : > { %547 = vst [vmem:[#allocation2] sm:$0xff] %v539_v43  ;;  %551 = vst [vmem:[#allocation2 + $0x20] sm:$0xff] %v543_v44  ;;  %v477_v51 = vadd.f32 %v955_v16, %v476_v49  ;;  %v509_v52 = vadd.f32 %v955_v16, %v508_v50  ;;  %v1037_v53 = vpop.f32.mrb[6].mxu0  ;;  %v1045_v54 = vpop.f32.mrb[6].mxu1 }
 0x199   : > { %v488_v55 = vadd.f32 %v1037_v53, %v955_v16  ;;  %v520_v56 = vadd.f32 %v1045_v54, %v955_v16  ;;  %v479_v57 = vpop.f32.mrb[7].mxu0  ;;  %v511_v58 = vpop.f32.mrb[7].mxu1  ;;  %v529_v61 = vmax.f32 %v485_v47, 0.0  ;;  %v537_v62 = vmax.f32 %v517_v48, 0.0 }
 0x19a   : > { %v480_v59 = vadd.f32 %v955_v16, %v479_v57  ;;  %v512_v60 = vadd.f32 %v955_v16, %v511_v58  ;;  %v527_v1 = vmax.f32 %v477_v51, 0.0  ;;  %v535_v2 = vmax.f32 %v509_v52, 0.0 }
 0x19b   : > { %v530_v63 = vmax.f32 %v488_v55, 0.0  ;;  %v538_v0 = vmax.f32 %v520_v56, 0.0 }
 0x19c   : > { %v528_v3 = vmax.f32 %v480_v59, 0.0  ;;  %v536_v4 = vmax.f32 %v512_v60, 0.0 }
 0x19d   : > { %v542_v5 = vpack.c.bf16 %v530_v63, %v529_v61  ;;  %v546_v6 = vpack.c.bf16 %v538_v0, %v537_v62 }
 0x19e   : > { %v541_v7 = vpack.c.bf16 %v528_v3, %v527_v1  ;;  %v545_v8 = vpack.c.bf16 %v536_v4, %v535_v2 }
 0x19f   : > { %550 = vst [vmem:[#allocation2 + $0x18] sm:$0xff] %v542_v5  ;;  %554 = vst [vmem:[#allocation2 + $0x38] sm:$0xff] %v546_v6 }
 0x1a0   : > { %549 = vst [vmem:[#allocation2 + $0x10] sm:$0xff] %v541_v7  ;;  %553 = vst [vmem:[#allocation2 + $0x30] sm:$0xff] %v545_v8 }
 0x1a1 PF: > { %v1245_v9 = vld [vmem:[%s1849_s8 + $0x4] ss:$8 sps:$4 sm:$0xff]   ;;  %v1247_v10 = vld [vmem:[%s1849_s8] ss:$8 sps:$4 sm:$0xff]   ;;  %v1521_v11 = vmov 0   ;;  %s2075_s6 = sld [smem:[#allocation16_spill]] }
 0x1a2   : > { %691 = vmatprep.mubr.bf16.mxu0 %v1521_v11  ;;  %731 = vmatprep.mubr.bf16.mxu1 %v1521_v11  ;;  %v1248_v12 = vld [vmem:[%s1849_s8 + $0x14] ss:$8 sps:$4 sm:$0xff]   ;;  %v1250_v13 = vld [vmem:[%s1849_s8 + $0x10] ss:$8 sps:$4 sm:$0xff]   ;;  %v1251_v14 = vld [vmem:[%s1849_s8 + $0x24] ss:$8 sps:$4 sm:$0xff]  }
 0x1a3   : > { %659 = vmatprep.subr.bf16.mxu0 %v1245_v9  ;;  %1062 = vmatprep.subr.bf16.mxu1 %v1245_v9  ;;  %v1253_v15 = vld [vmem:[%s1849_s8 + $0x20] ss:$8 sps:$4 sm:$0xff]   ;;  %v1254_v16 = vld [vmem:[%s1849_s8 + $0x34] ss:$8 sps:$4 sm:$0xff]   ;;  %v1256_v17 = vld [vmem:[%s1849_s8 + $0x30] ss:$8 sps:$4 sm:$0xff]  }
 0x1a4   : > { %660 = vmatpush1.bf16.msra.mxu0 %v1247_v10  ;;  %1070 = vmatpush1.bf16.msra.mxu1 %v1247_v10  ;;  %v1257_v18 = vld [vmem:[%s1849_s8 + $0x44] ss:$8 sps:$4 sm:$0xff]   ;;  %v1259_v19 = vld [vmem:[%s1849_s8 + $0x40] ss:$8 sps:$4 sm:$0xff]   ;;  %v1260_v20 = vld [vmem:[%s1849_s8 + $0x54] ss:$8 sps:$4 sm:$0xff]  }
 0x1a5   : > { %661 = vmatprep.subr.bf16.mxu0 %v1248_v12  ;;  %1063 = vmatprep.subr.bf16.mxu1 %v1248_v12  ;;  %v1262_v21 = vld [vmem:[%s1849_s8 + $0x50] ss:$8 sps:$4 sm:$0xff]   ;;  %v1263_v22 = vld [vmem:[%s1849_s8 + $0x64] ss:$8 sps:$4 sm:$0xff]   ;;  %v1265_v23 = vld [vmem:[%s1849_s8 + $0x60] ss:$8 sps:$4 sm:$0xff]  }
 0x1a6   : > { %v1266_v24 = vld [vmem:[%s1849_s8 + $0x74] ss:$8 sps:$4 sm:$0xff]   ;;  %v1268_v25 = vld [vmem:[%s1849_s8 + $0x70] ss:$8 sps:$4 sm:$0xff]   ;;  %v555_v26 = vld [vmem:[#allocation2] sm:$0xff]  ;;  %s2076_s27 = sld [smem:[#allocation17_spill]] }
 0x1a7   : > { %v559_v27 = vld [vmem:[#allocation2 + $0x20] sm:$0xff]  ;;  %v556_v28 = vld [vmem:[#allocation2 + $0x8] sm:$0xff]  ;;  %v557_v30 = vld [vmem:[#allocation2 + $0x10] sm:$0xff]  ;;  %s990_s20 = sshll.u32 %s2075_s6, 1  ;;  %s821_s25 = sshll.u32 %s1858_s4, 4  ;;  %s1930_s25 = int_to_ptr.vmem [resolvable:$true] %s821_s25 }
 0x1a8   : > { %662 = vmatpush1.bf16.msra.mxu0 %v1250_v13  ;;  %1071 = vmatpush1.bf16.msra.mxu1 %v1250_v13  ;;  %v560_v29 = vld [vmem:[#allocation2 + $0x28] sm:$0xff]  ;;  %v561_v31 = vld [vmem:[#allocation2 + $0x30] sm:$0xff]  ;;  %v558_v32 = vld [vmem:[#allocation2 + $0x18] sm:$0xff]  ;;  %s2077_s11 = sld [smem:[#allocation27_spill]]  ;;  %s1940_s0 = scalar_lea.sflag [#allocation5], %s279_s5 }
 0x1a9   : > { %663 = vmatprep.subr.bf16.mxu0 %v1251_v14  ;;  %1064 = vmatprep.subr.bf16.mxu1 %v1251_v14  ;;  %v562_v33 = vld [vmem:[#allocation2 + $0x38] sm:$0xff]  ;;  %s1357_s12 = scalar_lea.vmem %s1930_s25, 4096  ;;  %p2078_p11 = scmp.ne.s32.totalorder %s2059_s18, 0 }
 0x1aa   : > { %p1358_p3 = scmp.ne.s32.totalorder %s1930_s25, %s1357_s12  ;;  %s1522_s8 = smov [#allocation9]  }
 0x1ab   : > { %s1361_s10 = sshll.u32 %s1522_s8, 4  ;;  %s1362_s10 = int_to_ptr.vmem [resolvable:$false] %s1361_s10 }
 0x1ac   : > { %664 = vmatpush1.bf16.msra.mxu0 %v1253_v15  ;;  %1072 = vmatpush1.bf16.msra.mxu1 %v1253_v15  ;;  %s997_s23 = sshll.u32 %s2076_s27, 6  ;;  %p1359_p9 = pnand %p1358_p3, %p2078_p11 }
 0x1ad   : > { %665 = vmatprep.subr.bf16.mxu0 %v1254_v16  ;;  %1065 = vmatprep.subr.bf16.mxu1 %v1254_v16  ;;  %s818_s26 = sadd.s32 %s997_s23, %s990_s20  ;;  %s1363_s29 = scalar_lea.vmem %s1362_s10, 8192 }
 0x1ae   : > { %s992_s13 = sshll.u32 %s818_s26, 7  ;;  %p1360_p12 = pneg %p1359_p9 }
 0x1af   : > { %s1926_s9 = scalar_lea.hbm %s2077_s11, %s992_s13  ;;  %p1364_p6 = scmp.lt.s32.totalorder %s1930_s25, %s1362_s10 }
 0x1b0   : > { %666 = vmatpush1.bf16.msra.mxu0 %v1256_v17  ;;  %1073 = vmatpush1.bf16.msra.mxu1 %v1256_v17  ;;  %p1365_p5 = scmp.lt.s32.totalorder %s1363_s29, %s1357_s12 }
 0x1b1   : > { %667 = vmatprep.subr.bf16.mxu0 %v1257_v18  ;;  %1066 = vmatprep.subr.bf16.mxu1 %v1257_v18 }
 0x1b2   : > { %p1366_p4 = por %p1365_p5, %p1364_p6 }
 0x1b4   : > { %668 = vmatpush1.bf16.msra.mxu0 %v1259_v19  ;;  %1074 = vmatpush1.bf16.msra.mxu1 %v1259_v19  ;;  %p1367_p10 = pnand %p1366_p4, %p1360_p12 }
 0x1b5   : > { %669 = vmatprep.subr.bf16.mxu0 %v1260_v20  ;;  %1067 = vmatprep.subr.bf16.mxu1 %v1260_v20 }
 0x1b8   : > { %670 = vmatpush1.bf16.msra.mxu0 %v1262_v21  ;;  %1075 = vmatpush1.bf16.msra.mxu1 %v1262_v21 }
 0x1b9   : > { %671 = vmatprep.subr.bf16.mxu0 %v1263_v22  ;;  %1068 = vmatprep.subr.bf16.mxu1 %v1263_v22 }
 0x1bc   : > { %672 = vmatpush1.bf16.msra.mxu0 %v1265_v23  ;;  %1076 = vmatpush1.bf16.msra.mxu1 %v1265_v23 }
 0x1bd   : > { %673 = vmatprep.subr.bf16.mxu0 %v1266_v24  ;;  %1069 = vmatprep.subr.bf16.mxu1 %v1266_v24 }
 0x1c0   : > { %674 = vmatpush1.bf16.msra.mxu0 %v1268_v25  ;;  %1077 = vmatpush1.bf16.msra.mxu1 %v1268_v25 }
 0x1c3   : > { %692 = vmatmul.mubr.bf16.vlgmr.msra.gmra.mrb[0].mxu0 %v555_v26  ;;  %732 = vmatmul.mubr.bf16.vlgmr.msra.gmra.mrb[0].mxu1 %v559_v27 }
 0x1c4   : > { %701 = vmatprep.mubr.bf16.mxu0 %v1521_v11  ;;  %741 = vmatprep.mubr.bf16.mxu1 %v1521_v11 }
 0x1cb   : > { %702 = vmatmul.mubr.bf16.gmra.mrb[4].mxu0 %v556_v28  ;;  %742 = vmatmul.mubr.bf16.gmra.mrb[4].mxu1 %v560_v29 }
 0x1cc   : > { %711 = vmatprep.mubr.bf16.mxu0 %v1521_v11  ;;  %751 = vmatprep.mubr.bf16.mxu1 %v1521_v11 }
 0x1d3   : > { %712 = vmatmul.mubr.bf16.gmra.mrb[8].mxu0 %v557_v30  ;;  %752 = vmatmul.mubr.bf16.gmra.mrb[8].mxu1 %v561_v31 }
 0x1d4   : > { %721 = vmatprep.mubr.bf16.mxu0 %v1521_v11  ;;  %761 = vmatprep.mubr.bf16.mxu1 %v1521_v11 }
 0x1db   : > { %722 = vmatmul.mubr.bf16.gmra.mrb[12].mxu0 %v558_v32  ;;  %762 = vmatmul.mubr.bf16.gmra.mrb[12].mxu1 %v562_v33 }
 0x296   : > { %v693_v34 = vpop.f32.mrb[0].mxu0  ;;  %v733_v35 = vpop.f32.mrb[0].mxu1 }
 0x297   : > { %772 = vst [vmem:[%s1858_s4] sm:$0xff] %v693_v34  ;;  %788 = vst [vmem:[%s1858_s4 + $0x80] sm:$0xff] %v733_v35  ;;  %v695_v36 = vpop.f32.mrb[1].mxu0  ;;  %v735_v37 = vpop.f32.mrb[1].mxu1 }
 0x298   : > { %773 = vst [vmem:[%s1858_s4 + $0x8] sm:$0xff] %v695_v36  ;;  %789 = vst [vmem:[%s1858_s4 + $0x88] sm:$0xff] %v735_v37  ;;  %v697_v38 = vpop.f32.mrb[2].mxu0  ;;  %v737_v39 = vpop.f32.mrb[2].mxu1 }
 0x299   : > { %774 = vst [vmem:[%s1858_s4 + $0x10] sm:$0xff] %v697_v38  ;;  %790 = vst [vmem:[%s1858_s4 + $0x90] sm:$0xff] %v737_v39  ;;  %v699_v40 = vpop.f32.mrb[3].mxu0  ;;  %v739_v41 = vpop.f32.mrb[3].mxu1 }
 0x29a   : > { %775 = vst [vmem:[%s1858_s4 + $0x18] sm:$0xff] %v699_v40  ;;  %791 = vst [vmem:[%s1858_s4 + $0x98] sm:$0xff] %v739_v41 }
 0x29e   : > { %v703_v42 = vpop.f32.mrb[4].mxu0  ;;  %v743_v43 = vpop.f32.mrb[4].mxu1 }
 0x29f   : > { %776 = vst [vmem:[%s1858_s4 + $0x20] sm:$0xff] %v703_v42  ;;  %792 = vst [vmem:[%s1858_s4 + $0xa0] sm:$0xff] %v743_v43  ;;  %v705_v44 = vpop.f32.mrb[5].mxu0  ;;  %v745_v45 = vpop.f32.mrb[5].mxu1 }
 0x2a0   : > { %777 = vst [vmem:[%s1858_s4 + $0x28] sm:$0xff] %v705_v44  ;;  %793 = vst [vmem:[%s1858_s4 + $0xa8] sm:$0xff] %v745_v45  ;;  %v707_v46 = vpop.f32.mrb[6].mxu0  ;;  %v747_v47 = vpop.f32.mrb[6].mxu1 }
 0x2a1   : > { %778 = vst [vmem:[%s1858_s4 + $0x30] sm:$0xff] %v707_v46  ;;  %794 = vst [vmem:[%s1858_s4 + $0xb0] sm:$0xff] %v747_v47  ;;  %v709_v48 = vpop.f32.mrb[7].mxu0  ;;  %v749_v49 = vpop.f32.mrb[7].mxu1 }
 0x2a2   : > { %779 = vst [vmem:[%s1858_s4 + $0x38] sm:$0xff] %v709_v48  ;;  %795 = vst [vmem:[%s1858_s4 + $0xb8] sm:$0xff] %v749_v49 }
 0x2a6   : > { %v713_v50 = vpop.f32.mrb[8].mxu0  ;;  %v753_v51 = vpop.f32.mrb[8].mxu1 }
 0x2a7   : > { %780 = vst [vmem:[%s1858_s4 + $0x40] sm:$0xff] %v713_v50  ;;  %796 = vst [vmem:[%s1858_s4 + $0xc0] sm:$0xff] %v753_v51  ;;  %v715_v52 = vpop.f32.mrb[9].mxu0  ;;  %v755_v53 = vpop.f32.mrb[9].mxu1 }
 0x2a8   : > { %781 = vst [vmem:[%s1858_s4 + $0x48] sm:$0xff] %v715_v52  ;;  %797 = vst [vmem:[%s1858_s4 + $0xc8] sm:$0xff] %v755_v53  ;;  %v717_v54 = vpop.f32.mrb[10].mxu0  ;;  %v757_v55 = vpop.f32.mrb[10].mxu1 }
 0x2a9   : > { %782 = vst [vmem:[%s1858_s4 + $0x50] sm:$0xff] %v717_v54  ;;  %798 = vst [vmem:[%s1858_s4 + $0xd0] sm:$0xff] %v757_v55  ;;  %v719_v56 = vpop.f32.mrb[11].mxu0  ;;  %v759_v57 = vpop.f32.mrb[11].mxu1 }
 0x2aa   : > { %783 = vst [vmem:[%s1858_s4 + $0x58] sm:$0xff] %v719_v56  ;;  %799 = vst [vmem:[%s1858_s4 + $0xd8] sm:$0xff] %v759_v57 }
 0x2ae   : > { %v723_v58 = vpop.f32.mrb[12].mxu0  ;;  %v763_v59 = vpop.f32.mrb[12].mxu1 }
 0x2af   : > { %784 = vst [vmem:[%s1858_s4 + $0x60] sm:$0xff] %v723_v58  ;;  %800 = vst [vmem:[%s1858_s4 + $0xe0] sm:$0xff] %v763_v59  ;;  %v725_v60 = vpop.f32.mrb[13].mxu0  ;;  %v765_v61 = vpop.f32.mrb[13].mxu1 }
 0x2b0   : > { %785 = vst [vmem:[%s1858_s4 + $0x68] sm:$0xff] %v725_v60  ;;  %801 = vst [vmem:[%s1858_s4 + $0xe8] sm:$0xff] %v765_v61  ;;  %v727_v62 = vpop.f32.mrb[14].mxu0  ;;  %v767_v63 = vpop.f32.mrb[14].mxu1 }
 0x2b1   : > { %786 = vst [vmem:[%s1858_s4 + $0x70] sm:$0xff] %v727_v62  ;;  %802 = vst [vmem:[%s1858_s4 + $0xf0] sm:$0xff] %v767_v63  ;;  %v729_v0 = vpop.f32.mrb[15].mxu0  ;;  %v769_v1 = vpop.f32.mrb[15].mxu1 }
 0x2b2   : > { %787 = vst [vmem:[%s1858_s4 + $0x78] sm:$0xff] %v729_v0  ;;  %803 = vst [vmem:[%s1858_s4 + $0xf8] sm:$0xff] %v769_v1 }
 0x2b3   : > { %1370 = shalt.err (!%p1367_p10)
}
 0x2b4   : > { %s1371_s5 = scalar_lea.hbm %s1926_s9, 4096  ;;  %s1375_s30 = scalar_lea.hbm %s2077_s11, 16384 }
 0x2b5   : > { %p1372_p8 = scmp.ne.s32.totalorder %s1926_s9, %s1371_s5  ;;  %p1376_p13 = scmp.lt.u32.totalorder %s1926_s9, %s2077_s11 }
 0x2b6   : > { %p1377_p7 = scmp.lt.u32.totalorder %s1375_s30, %s1371_s5  ;;  %p1379_p3 = scmp.lt.u32.totalorder %s1371_s5, %s1926_s9 }
 0x2b7   : > { %p1373_p2 = pnand %p1372_p8, %p2078_p11 }
 0x2b8   : > { %p1378_p1 = por %p1377_p7, %p1376_p13 }
 0x2b9   : > { %p1374_p0 = pneg %p1373_p2 }
 0x2ba   : > { %p1380_p9 = por %p1379_p3, %p1378_p1 }
 0x2bc   : > { %p1381_p12 = pnand %p1380_p9, %p1374_p0 }
 0x2be   : > { %1384 = shalt.err (!%p1381_p12)
}
 0x2bf   : > { %s1523_s27 = smov 256   ;;  %s1524_s20 = smov 512  }
 0x2c0   : > { %s1525_s23 = smov 16  }
 0x2c1   : > { %1086 = dma.vmem_to_hbm [thread:$0]  (%p2078_p11), %s1930_s25, 4096, %s1926_s9, %s1940_s0, %s1523_s27, %s1524_s20, %s1525_s23  }
 0x2c2 PF: > { %p1106_p6 = scmp.ge.s32.totalorder %s1511_s28, 2  ;;  %s836_s26 = sand.u32 1, %s1459_s15  }
 0x2c3   : > { %p2079_p5 = scmp.ne.s32.totalorder %s2060_s7, 0  ;;  %s837_s13 = scalar_lea.sflag [#allocation5], %s836_s26 }
 0x2c5   : > { %p1100_p4 = pnand %p1106_p6, %p2079_p5 }
 0x2c7   : > { %1454 = dma.done.wait (!%p1100_p4), %s837_s13, 4096  }
 0x2c8   : > { %1456 = vsyncadd (!%p1100_p4), %s837_s13, 4294963200  ;;  %s21_s28 = sadd.s32 1, %s1511_s28   ;;  %s2081_s18 = sld [smem:[#allocation23_spill]] }
 0x2c9   : > { %p1969_p10 = scmp.ge.s32.totalorder %s21_s28, 6   ;;  %s2082_s25 = sld [smem:[#allocation14_spill]] }
 0x2ca   : > { %s2083_s20 = sld [smem:[#allocation24_spill]]  ;;  %s2084_s24 = sld [smem:[#allocation15_spill]] }
 0x2cb   : > { %s2085_s23 = sld [smem:[#allocation22_spill]]  ;;  %s2086_s7 = sld [smem:[#allocation18_spill]] }
 0x2cc   : > { %s2087_s9 = sld [smem:[#allocation19_spill]]  ;;  %s2088_s26 = sld [smem:[#allocation20_spill]] }
 0x2cd   : > { %s2089_s27 = sld [smem:[#allocation21_spill]]  ;;  %s2090_s15 = smov %s1463_s16 }
 0x2ce   : > { %s2091_s16 = smov %s1467_s17  ;;  %s2092_s17 = smov %s2081_s18 }
 0x2cf   : > { %s2093_s18 = smov %s1475_s19  ;;  %s2094_s19 = smov %s2082_s25 }
 0x2d0   : > { %s2095_s21 = smov %s1487_s22  ;;  %s2096_s22 = smov %s2084_s24 }
 0x2d1   : > { %s2097_s24 = smov %s2086_s7  ;;  %20 = sbr.rel (!%p1969_p10) target bundleno = 15 (0xf), region = 100 }
 0x2d2   : > { %s2098_s25 = smov %s2087_s9 }
 0x2d8   :  { %842 = vsyncpa [#allocation4], 1 }
 0x2d9   :  { %844 = vsyncpa [#allocation4 + $0x1], 1 }
 0x2da   :  { %845 = vsyncpa [#allocation7], 1 }
 0x2db   :  { %846 = vsyncpa [#allocation5], 1 }
 0x2dc   :  { %848 = vsyncpa [#allocation5 + $0x1], 1 }

</bundles_post_ra>
